<compile_context>
chip_gen: v7x
topology: tpu7x:2x2x1
jax: 0.10.0
libtpu: 0.0.40
codegen_flags: <defaults>
</compile_context>

<pallas_src>
import math

import jax
import jax.numpy as jnp
from jax.experimental import pallas as pl
from jax.experimental.pallas import tpu as pltpu


def _build_pe(max_len: int, d_model: int, dtype=jnp.float32) -> jnp.ndarray:
    """2-D sinusoidal table (max_len, d_model), equal to the torch buffer's
    pe[:, 0, :]. Built once in the model dtype (no per-forward cast)."""
    position = jnp.arange(0, max_len, dtype=jnp.float32)[:, None]          # (L, 1)
    div_term = jnp.exp(
        jnp.arange(0, d_model, 2, dtype=jnp.float32)
        * (-math.log(10000.0) / d_model)
    )                                                                       # (D/2,)
    angles = position * div_term                                            # (L, D/2)
    pe = jnp.zeros((max_len, d_model), dtype=jnp.float32)
    pe = pe.at[:, 0::2].set(jnp.sin(angles))
    pe = pe.at[:, 1::2].set(jnp.cos(angles))
    return pe.astype(dtype)


def _pos_enc_kernel_3d(x_ref, pe_ref, o_ref):
    # x_ref: (ts, B, dt); pe_ref: (ts, dt) -> broadcast add over the batch axis.
    o_ref[...] = x_ref[...] + pe_ref[...][:, None, :]


def _pos_enc_kernel_2d(x_ref, pe_ref, o_ref):
    # batch==1 fast path: both operands are dense (ts, dt) tiles.
    o_ref[...] = x_ref[...] + pe_ref[...]


def _round_up(v: int, m: int) -> int:
    return ((v + m - 1) // m) * m


def _sublane_multiple(dtype) -> int:
    # f32 -> 8, bf16 -> 16, int8/fp8 -> 32 (sub-32-bit dtypes pack along sublanes).
    return max(8, 32 // jnp.dtype(dtype).itemsize)


def _vmem_capacity_bytes() -> int:
    try:
        info = pltpu.get_tpu_info()
        cap = getattr(info, "vmem_capacity_bytes", None)
        if cap:
            return int(cap)
    except Exception:
        pass
    return 64 << 20  # v7x has the smallest VMEM; safe fallback for all gens


def positional_encoding(
    x: jnp.ndarray,
    pe_table: jnp.ndarray,
    *,
    donate_x: bool = False,
    target_block_bytes: int | None = None,
) -> jnp.ndarray:
    """out = x + pe[:seq_len] (eval-mode dropout = identity).

    x:        (seq_len, batch, d_model)
    pe_table: (max_len, d_model) or (max_len, 1, d_model); ideally already in x.dtype.
    donate_x: set True only when the caller donates x's buffer; otherwise XLA
              inserts a defensive full copy of x (doubles HBM traffic).
    """
    seq_len, batch, d_model = x.shape
    pe2d = (
        pe_table.reshape(pe_table.shape[0], pe_table.shape[-1])
        if pe_table.ndim == 3
        else pe_table
    )
    assert pe2d.shape[0] >= seq_len and pe2d.shape[1] == d_model
    if pe2d.dtype != x.dtype:
        # Prefer building/caching the table in the model dtype (see _build_pe);
        # this fallback cast streams the whole table through HBM each call.
        pe2d = pe2d.astype(x.dtype)

    itemsize = jnp.dtype(x.dtype).itemsize
    sub = _sublane_multiple(x.dtype)
    vmem_cap = _vmem_capacity_bytes()
    vmem_budget = int(0.70 * vmem_cap)
    if target_block_bytes is None:
        # Bigger tiles when VMEM is plentiful (v5e/v6e: 128 MiB); ~8 MiB on v7x.
        target_block_bytes = (16 << 20) if vmem_cap >= (96 << 20) else (8 << 20)

    squeeze_batch = batch == 1

    if squeeze_batch:
        x_in = x.reshape(seq_len, d_model)  # contiguous, free

        def x_row_pad_bytes(dt_):
            return _round_up(dt_, 128) * itemsize

        def padded_vmem_bytes(ts_, dt_):
            blk = _round_up(ts_, sub) * _round_up(dt_, 128) * itemsize
            return 2 * (3 * blk) + (1 << 20)  # x, out, pe double-buffered + slack
    else:
        x_in = x

        def x_row_pad_bytes(dt_):
            return _round_up(batch, sub) * _round_up(dt_, 128) * itemsize

        def padded_vmem_bytes(ts_, dt_):
            xblk = ts_ * _round_up(batch, sub) * _round_up(dt_, 128) * itemsize
            peblk = _round_up(ts_, sub) * _round_up(dt_, 128) * itemsize
            return 2 * (2 * xblk + peblk) + (1 << 20)

    # --- choose the seq-axis tile size ---------------------------------------
    row_bytes = x_row_pad_bytes(d_model)
    ts = max(1, target_block_bytes // row_bytes)
    ts = min(ts, seq_len)

    # v7x has 2 TensorCores sharing the grid's "parallel" axes: give the seq
    # axis >= 2 sizeable steps when the tensor is large. On 1-TC chips this
    # costs a single extra ~0.35us step, noise next to >=4 MiB of HBM traffic.
    if ts >= seq_len and seq_len * row_bytes >= (4 << 20):
        ts = pl.cdiv(seq_len, 2)

    if ts >= seq_len:
        ts = seq_len
    else:
        ts = min(seq_len, _round_up(max(ts, 8), 8))  # keep pe's (ts, dt) block 8-aligned

    # --- shrink tiles until padded, double-buffered usage fits the budget -----
    dt = d_model
    while padded_vmem_bytes(ts, dt) > vmem_budget and ts > 8:
        ts = max(8, ((ts // 2) // 8) * 8)
    while padded_vmem_bytes(ts, dt) > vmem_budget and dt > 128:
        dt = max(128, _round_up(dt // 2, 128))

    # pe's (ts, dt) block: the sublane dim must be a multiple of 8 or equal the
    # full table length; when ts is unaligned (only possible if ts == seq_len),
    # slice the table so the block spans the whole (sliced) first dim.
    pe_used = pe2d
    if ts % 8 != 0:
        pe_used = pe2d[:seq_len]

    grid = (pl.cdiv(seq_len, ts), pl.cdiv(d_model, dt))
    vmem_needed = padded_vmem_bytes(ts, dt)
    vmem_limit = int(min(max(vmem_needed, 32 << 20), vmem_cap))

    cost = pl.CostEstimate(
        flops=seq_len * batch * d_model,
        transcendentals=0,
        bytes_accessed=(2 * seq_len * batch * d_model + seq_len * d_model) * itemsize,
    )

    pe_spec = pl.BlockSpec((ts, dt), lambda s, d: (s, d))
    if squeeze_batch:
        kernel = _pos_enc_kernel_2d
        x_spec = pl.BlockSpec((ts, dt), lambda s, d: (s, d))
        out_spec = pl.BlockSpec((ts, dt), lambda s, d: (s, d))
        out_shape = jax.ShapeDtypeStruct((seq_len, d_model), x.dtype)
    else:
        kernel = _pos_enc_kernel_3d
        x_spec = pl.BlockSpec((ts, batch, dt), lambda s, d: (s, 0, d))
        out_spec = pl.BlockSpec((ts, batch, dt), lambda s, d: (s, 0, d))
        out_shape = jax.ShapeDtypeStruct((seq_len, batch, d_model), x.dtype)

    out = pl.pallas_call(
        kernel,
        out_shape=out_shape,
        grid_spec=pltpu.PrefetchScalarGridSpec(
            num_scalar_prefetch=0,
            grid=grid,
            in_specs=[x_spec, pe_spec],
            out_specs=out_spec,
        ),
        compiler_params=pltpu.CompilerParams(
            dimension_semantics=("parallel", "parallel"),
            vmem_limit_bytes=vmem_limit,
        ),
        cost_estimate=cost,
        input_output_aliases=({0: 0} if donate_x else {}),
    )(x_in, pe_used)

    if squeeze_batch:
        out = out.reshape(seq_len, 1, d_model)
    return out


if __name__ == "__main__":
    # Small shapes consistent with the forward: (seq, batch, d_model)
    seq_len, batch, d_model = 8, 2, 32
    max_len = 5000

    key = jax.random.PRNGKey(0)
    x = jax.random.normal(key, (seq_len, batch, d_model), dtype=jnp.float32)

    # Table built once in the model dtype (2-D layout).
    pe2d = _build_pe(max_len, d_model, dtype=x.dtype)

    # plain-JAX reference (eval-mode dropout = identity)
    ref = x + pe2d[:seq_len][:, None, :]
    ref = jax.block_until_ready(ref)

    out = positional_encoding(x, pe2d)
    out = jax.block_until_ready(out)
    assert out.shape == ref.shape and out.dtype == ref.dtype
    assert jnp.allclose(out, ref, atol=1e-6, rtol=1e-6)

    # also exercise the batch==1 dense fast path
    x1 = jax.random.normal(jax.random.PRNGKey(1), (seq_len, 1, d_model), dtype=jnp.float32)
    ref1 = x1 + pe2d[:seq_len][:, None, :]
    out1 = jax.block_until_ready(positional_encoding(x1, pe2d))
    assert out1.shape == ref1.shape and jnp.allclose(out1, ref1, atol=1e-6, rtol=1e-6)

    print("KERNEL_OK")
</pallas_src>

<mosaic_0001>
module attributes {stable_mosaic.version = 11 : i64} {
  func.func @_pos_enc_kernel_3d(%arg0: i32, %arg1: i32, %arg2: memref<8x2x32xf32, #tpu.memory_space<vmem>>, %arg3: memref<8x32xf32, #tpu.memory_space<vmem>>, %arg4: memref<8x2x32xf32, #tpu.memory_space<vmem>>) attributes {dimension_semantics = [#tpu.dimension_semantics<parallel>, #tpu.dimension_semantics<parallel>], iteration_bounds = array<i64: 1, 1>, scalar_prefetch = 0 : i64, scratch_operands = 0 : i64, tpu.core_type = #tpu.core_type<tc>, window_params = [{transform_indices = @transform_0, window_bounds = array<i64: 8, 2, 32>}, {transform_indices = @transform_1, window_bounds = array<i64: 8, 32>}, {transform_indices = @transform_2, window_bounds = array<i64: 8, 2, 32>}]} {
    %c0 = arith.constant 0 : index
    %c0_0 = arith.constant 0 : index
    %c0_1 = arith.constant 0 : index
    %0 = vector.load %arg2[%c0, %c0_0, %c0_1] : memref<8x2x32xf32, #tpu.memory_space<vmem>>, vector<8x2x32xf32>
    %c0_2 = arith.constant 0 : index
    %c0_3 = arith.constant 0 : index
    %1 = vector.load %arg3[%c0_2, %c0_3] : memref<8x32xf32, #tpu.memory_space<vmem>>, vector<8x32xf32>
    %2 = vector.shape_cast %1 : vector<8x32xf32> to vector<8x1x32xf32>
    %3 = vector.broadcast %2 : vector<8x1x32xf32> to vector<8x2x32xf32>
    %4 = arith.addf %0, %3 : vector<8x2x32xf32>
    %c0_4 = arith.constant 0 : index
    %c0_5 = arith.constant 0 : index
    %c0_6 = arith.constant 0 : index
    %5 = vector.load %arg4[%c0_4, %c0_5, %c0_6] : memref<8x2x32xf32, #tpu.memory_space<vmem>>, vector<8x2x32xf32>
    tpu.vector_store %arg4[%c0_4, %c0_5, %c0_6], %4 {strides = array<i32>} : memref<8x2x32xf32, #tpu.memory_space<vmem>>, vector<8x2x32xf32>,
    return
  }
  func.func @transform_0(%arg0: i32, %arg1: i32) -> (i32, i32, i32) {
    %c0_i32 = arith.constant 0 : i32
    %c0_i32_0 = arith.constant 0 : i32
    return %arg0, %c0_i32, %arg1 : i32, i32, i32
  }
  func.func @transform_1(%arg0: i32, %arg1: i32) -> (i32, i32) {
    %c0_i32 = arith.constant 0 : i32
    return %arg0, %arg1 : i32, i32
  }
  func.func @transform_2(%arg0: i32, %arg1: i32) -> (i32, i32, i32) {
    %c0_i32 = arith.constant 0 : i32
    %c0_i32_0 = arith.constant 0 : i32
    return %arg0, %c0_i32, %arg1 : i32, i32, i32
  }
}

</mosaic_0001>

<bundles_post_ra>
// kernel: tpu_custom_call.1
= control target key start
LH: loop header
LB: loop body
LE: loop exit
PB: predicated region body
PF: predicated region fallthrough
CT: control target
= control target key end

     0   :  { %v26_v1 = vlaneseq  ;;  %v172_v2 = vmov 1966171168   ;;  %s238_s0 = inlined_call_operand.vmem [shape: f32[8,2,32], index: 0, kind: input, shape index: {}]   ;;  %s239_s1 = inlined_call_operand.vmem [shape: f32[5000,32], index: 1, kind: input, shape index: {}]   ;;  %s240_s2 = inlined_call_operand.hbm [shape: f32[8,2,32], index: 2, kind: output, shape index: {}]  }
   0x1   :  { %v20_v0 = vld [vmem:[%s239_s1] sm:$0xff]  ;;  %v24_v3 = vunpack.c.l.s4 %v172_v2 }
   0x2   :  { %v27_v4 = vshrl.u32 %v26_v1, 7  ;;  %v22_v6 = vcombine.high %v20_v0, %v20_v0 }
   0x3   :  { %v25_v5 = vunpack.c.0.s8 %v24_v3 }
   0x4   :  { %7 = vsyncpa [#allocation3], 0  ;;  %v73_v9 = vsub.s32 0, %v27_v4  ;;  %v12_v15 = vld [vmem:[%s238_s0] sm:$0x3]  ;;  %vm119_vm0 = vcmask 254976  }
   0x5   :  { %v28_v7 = vsub.s32 %v25_v5, %v27_v4  ;;  %v16_v19 = vld [vmem:[%s238_s0 + $0x8] sm:$0x3]  ;;  %v13_v21 = vld [vmem:[%s238_s0 + $0x2] sm:$0x3]  ;;  %v14_v22 = vld [vmem:[%s238_s0 + $0x4] sm:$0x3] }
   0x6   :  { %v17_v29 = vld [vmem:[%s238_s0 + $0xa] sm:$0x3]  ;;  %v18_v30 = vld [vmem:[%s238_s0 + $0xc] sm:$0x3]  ;;  %v15_v31 = vld [vmem:[%s238_s0 + $0x6] sm:$0x3] }
   0x7   :  { %v29_v8 = vrot.slane %v20_v0, %v28_v7  ;;  %v36_v10 = vrot.slane %v22_v6, %v28_v7  ;;  %v19_v39 = vld [vmem:[%s238_s0 + $0xe] sm:$0x3]  ;;  %s173_s26 = smov [#allocation2]  }
   0x8   :  { %s133_s27 = sshll.u32 %s173_s26, 4  ;;  %s134_s27 = int_to_ptr.vmem [resolvable:$true] %s133_s27 }
   0x9   :  { %v45_v11 = vrot.slane %v29_v8, %v28_v7  ;;  %v37_v12 = vcombine.high %v29_v8, %v29_v8  ;;  %v52_v13 = vrot.slane %v36_v10, %v28_v7  ;;  %v38_v14 = vcombine.high %v36_v10, %v36_v10  ;;  %s148_s0 = scalar_lea.vmem %s134_s27, 256  ;;  %p153_p1 = scmp.lt.s32.totalorder %s134_s27, %s134_s27 }
   0xa   :  { %p149_p0 = scmp.ne.s32.totalorder %s134_s27, %s148_s0  ;;  %p154_p2 = scmp.lt.s32.totalorder %s148_s0, %s148_s0 }
   0xb   :  { %v74_v16 = vrot.slane %v45_v11, %v73_v9  ;;  %v59_v17 = vrot.slane %v37_v12, %v28_v7  ;;  %v67_v18 = vcombine.high %v45_v11, %v45_v11  ;;  %v90_v20 = vrot.slane %v52_v13, %v73_v9 }
   0xc   :  { %v66_v23 = vrot.slane %v38_v14, %v28_v7  ;;  %v68_v24 = vcombine.high %v52_v13, %v52_v13  ;;  %p155_p3 = por %p154_p2, %p153_p1 }
   0xd   :  { %v111_v25 = vadd.f32 %v74_v16, %v12_v15  ;;  %v78_v26 = vrot.slane %v59_v17, %v73_v9  ;;  %v82_v27 = vrot.slane %v67_v18, %v73_v9  ;;  %v69_v28 = vcombine.high %v59_v17, %v59_v17 }
   0xe   :  { %v115_v32 = vadd.f32 %v90_v20, %v16_v19  ;;  %v94_v33 = vrot.slane %v66_v23, %v73_v9  ;;  %v98_v34 = vrot.slane %v68_v24, %v73_v9  ;;  %v70_v35 = vcombine.high %v66_v23, %v66_v23  ;;  %p156_p4 = pnand %p155_p3, %p149_p0 }
   0xf   :  { %120 = vst.msk [vmem:[#allocation2] sm:$0x3] %vm119_vm0, %v111_v25  ;;  %v112_v36 = vadd.f32 %v78_v26, %v13_v21  ;;  %v113_v37 = vadd.f32 %v82_v27, %v14_v22  ;;  %v86_v38 = vrot.slane %v69_v28, %v73_v9 }
  0x10   :  { %124 = vst.msk [vmem:[#allocation2 + $0x8] sm:$0x3] %vm119_vm0, %v115_v32  ;;  %v116_v40 = vadd.f32 %v94_v33, %v17_v29  ;;  %v117_v41 = vadd.f32 %v98_v34, %v18_v30  ;;  %v102_v42 = vrot.slane %v70_v35, %v73_v9 }
  0x11   :  { %121 = vst.msk [vmem:[#allocation2 + $0x2] sm:$0x3] %vm119_vm0, %v112_v36  ;;  %122 = vst.msk [vmem:[#allocation2 + $0x4] sm:$0x3] %vm119_vm0, %v113_v37  ;;  %v114_v43 = vadd.f32 %v86_v38, %v15_v31 }
  0x12   :  { %125 = vst.msk [vmem:[#allocation2 + $0xa] sm:$0x3] %vm119_vm0, %v116_v40  ;;  %126 = vst.msk [vmem:[#allocation2 + $0xc] sm:$0x3] %vm119_vm0, %v117_v41  ;;  %v118_v44 = vadd.f32 %v102_v42, %v19_v39 }
  0x13   :  { %123 = vst.msk [vmem:[#allocation2 + $0x6] sm:$0x3] %vm119_vm0, %v114_v43 }
  0x14   :  { %127 = vst.msk [vmem:[#allocation2 + $0xe] sm:$0x3] %vm119_vm0, %v118_v44 }
  0x15   :  { %159 = shalt.err (!%p156_p4)
}
  0x16   :  { %s160_s30 = scalar_lea.hbm %s240_s2, 256 }
  0x17   :  { %p161_p5 = scmp.ne.s32.totalorder %s240_s2, %s160_s30  ;;  %p164_p6 = scmp.lt.u32.totalorder %s160_s30, %s240_s2 }
  0x19   :  { %p166_p7 = pnand %p164_p6, %p161_p5 }
  0x1b   :  { %169 = shalt.err (!%p166_p7)
}
  0x1c   :  { %s174_s7 = smov 32   ;;  %s175_s8 = smov 2  }
  0x1d   :  { %139 = dma.vmem_to_hbm [thread:$0]  %s134_s27, 256, %s240_s2, [#allocation3], %s174_s7, %s174_s7, %s175_s8  }
  0x1e   :  { %170 = dma.done.wait [#allocation3], 256  }
  0x1f   :  { %171 = vsyncadd [#allocation3], 4294967040 }
  0x20   :  { %143 = vsyncpa [#allocation3], 1 }

</bundles_post_ra>
